<compile_context>
chip_gen: v7x
topology: tpu7x:2x2x1
jax: 0.10.0
libtpu: 0.0.40
codegen_flags: <defaults>
</compile_context>

<pallas_src>
import functools

import jax
import jax.numpy as jnp
from jax.experimental import pallas as pl
from jax.experimental.pallas import tpu as pltpu


_LANES = 128            # lane width of the packed weight/bias/output slabs
_MAX_TILE_ROWS = 2048   # batch-tile cap: >=512 for per-step amortization,
                        # small enough for v7x (64 MiB VMEM, 32 MiB scoped)


def _round_up(a, m):
    return (a + m - 1) // m * m


def _layer_shapes(input_dim, latent_dim):
    # (in_features, out_features) of the 8 Linear layers, in forward order.
    return (
        (input_dim, 10), (10, 5), (5, latent_dim),       # encoder
        (latent_dim, 5), (5, 10), (10, input_dim),       # decoder
        (latent_dim + 1, 10), (10, 2),                   # estimation
    )


def _weight_row_offsets(shapes):
    # Each layer's weight block starts on an 8-row (sublane-tile) boundary.
    offs = []
    r = 0
    for in_f, _ in shapes:
        offs.append(r)
        r += _round_up(in_f, 8)
    return tuple(offs), _round_up(max(r, 8), 8)


def dagmm_kernel(x_ref, w_ref, b_ref, out_ref, *,
                 input_dim, latent_dim, shapes, row_offs):
    x = x_ref[...]                      # (TB, input_dim) f32
    tb = x.shape[0]

    def linear(h, layer):
        in_f, out_f = shapes[layer]
        r0 = row_offs[layer]
        w = w_ref[r0:r0 + in_f, 0:out_f]            # static slab slice
        b = b_ref[layer:layer + 1, 0:out_f]         # (1, out_f) broadcast
        return jnp.dot(h, w, preferred_element_type=jnp.float32) + b

    # ---- encoder: Linear -> ReLU -> Linear -> ReLU -> Linear ----
    h = jnp.maximum(linear(x, 0), 0.0)
    h = jnp.maximum(linear(h, 1), 0.0)
    z_c = linear(h, 2)

    # ---- decoder: Linear -> ReLU -> Linear -> ReLU -> Linear ----
    h = jnp.maximum(linear(z_c, 3), 0.0)
    h = jnp.maximum(linear(h, 4), 0.0)
    x_hat = linear(h, 5)

    # ---- reconstruction error: mean((x - x_hat)^2, dim=1, keepdim) ----
    diff = x - x_hat
    rec = jnp.sum(diff * diff, axis=1, keepdims=True) * (1.0 / input_dim)

    # ---- z = concat([z_c, rec], dim=1) ----
    z = jnp.concatenate([z_c, rec], axis=1)

    # ---- estimation: Linear -> Tanh -> Linear -> Softmax(dim=1) ----
    e = jnp.tanh(linear(z, 6))
    logits = linear(e, 7)
    m = jnp.max(logits, axis=1, keepdims=True)
    ex = jnp.exp(logits - m)
    gamma = ex * pl.reciprocal(jnp.sum(ex, axis=1, keepdims=True), approx=True)

    # ---- lane-dense packed output: [ z_c | rec | x_hat | gamma | pad ] ----
    used = latent_dim + 1 + input_dim + 2
    pad = jnp.zeros((tb, _LANES - used), jnp.float32)
    out_ref[...] = jnp.concatenate([z, x_hat, gamma, pad], axis=1)


def init_linear(key, in_f, out_f):
    """PyTorch-style nn.Linear init (uniform +/- 1/sqrt(fan_in)), deterministic."""
    kw, kb = jax.random.split(key)
    bound = 1.0 / jnp.sqrt(jnp.float32(in_f))
    w = jax.random.uniform(kw, (in_f, out_f), jnp.float32, -bound, bound)  # transposed
    b = jax.random.uniform(kb, (1, out_f), jnp.float32, -bound, bound)
    return w, b


def make_dagmm_params(key, input_dim, latent_dim):
    keys = jax.random.split(key, 8)
    shapes = _layer_shapes(input_dim, latent_dim)
    params = []
    for k, (in_f, out_f) in zip(keys, shapes):
        w, b = init_linear(k, in_f, out_f)
        params.extend([w, b])
    return tuple(params)


def pack_params(params, input_dim, latent_dim):
    """Pack the 16 small weight/bias arrays into one weight slab + one bias slab."""
    shapes = _layer_shapes(input_dim, latent_dim)
    row_offs, n_rows = _weight_row_offsets(shapes)
    weights = params[0::2]
    biases = params[1::2]
    w_slab = jnp.zeros((n_rows, _LANES), jnp.float32)
    b_slab = jnp.zeros((8, _LANES), jnp.float32)
    for i, (w, b, (in_f, out_f), off) in enumerate(
            zip(weights, biases, shapes, row_offs)):
        w_slab = w_slab.at[off:off + in_f, 0:out_f].set(w.astype(jnp.float32))
        b_slab = b_slab.at[i, 0:out_f].set(jnp.reshape(b, (-1,)).astype(jnp.float32))
    return w_slab, b_slab


@functools.partial(jax.jit, static_argnames=("input_dim", "latent_dim"))
def dagmm_forward(x, w_slab, b_slab, *, input_dim, latent_dim):
    batch = x.shape[0]
    shapes = _layer_shapes(input_dim, latent_dim)
    row_offs, n_rows = _weight_row_offsets(shapes)

    # Batch tiling: multiple of 8 rows, capped for VMEM; pad so tiles divide.
    tb = min(_MAX_TILE_ROWS, _round_up(batch, 8))
    padded = _round_up(batch, tb)
    if padded != batch:
        x = jnp.pad(x, ((0, padded - batch), (0, 0)))
    grid = (padded // tb,)

    kernel = functools.partial(
        dagmm_kernel, input_dim=input_dim, latent_dim=latent_dim,
        shapes=shapes, row_offs=row_offs)

    packed = pl.pallas_call(
        kernel,
        out_shape=jax.ShapeDtypeStruct((padded, _LANES), jnp.float32),
        grid=grid,
        in_specs=[
            pl.BlockSpec((tb, input_dim), lambda i: (i, 0)),    # x: streamed per tile
            pl.BlockSpec((n_rows, _LANES), lambda i: (0, 0)),   # weight slab: resident
            pl.BlockSpec((8, _LANES), lambda i: (0, 0)),        # bias slab: resident
        ],
        out_specs=pl.BlockSpec((tb, _LANES), lambda i: (i, 0)),
        compiler_params=pltpu.CompilerParams(
            dimension_semantics=("parallel",),
            vmem_limit_bytes=32 * 1024 * 1024,
        ),
    )(x.astype(jnp.float32), w_slab, b_slab)

    lo = latent_dim + 1
    z_c = packed[:batch, 0:latent_dim]
    rec = packed[:batch, latent_dim:lo]
    z = packed[:batch, 0:lo]
    x_hat = packed[:batch, lo:lo + input_dim]
    gamma = packed[:batch, lo + input_dim:lo + input_dim + 2]
    return z_c, x_hat, rec, z, gamma


def dagmm_forward_ref(x, params):
    """Plain-JAX reference for correctness check."""
    (ew0, eb0, ew1, eb1, ew2, eb2,
     dw0, db0, dw1, db1, dw2, db2,
     sw0, sb0, sw1, sb1) = params
    h = jnp.maximum(x @ ew0 + eb0, 0.0)
    h = jnp.maximum(h @ ew1 + eb1, 0.0)
    z_c = h @ ew2 + eb2
    h = jnp.maximum(z_c @ dw0 + db0, 0.0)
    h = jnp.maximum(h @ dw1 + db1, 0.0)
    x_hat = h @ dw2 + db2
    rec = jnp.mean((x - x_hat) ** 2, axis=1, keepdims=True)
    z = jnp.concatenate([z_c, rec], axis=1)
    e = jnp.tanh(z @ sw0 + sb0)
    gamma = jax.nn.softmax(e @ sw1 + sb1, axis=1)
    return z_c, x_hat, rec, z, gamma


if __name__ == "__main__":
    input_dim = 16
    latent_dim = 4
    batch = 12   # not a multiple of the 8-row tile -> exercises the padding path

    key = jax.random.PRNGKey(0)
    kx, kp = jax.random.split(key)
    x = jax.random.normal(kx, (batch, input_dim), dtype=jnp.float32)
    params = make_dagmm_params(kp, input_dim, latent_dim)
    w_slab, b_slab = pack_params(params, input_dim, latent_dim)

    outs = dagmm_forward(x, w_slab, b_slab,
                         input_dim=input_dim, latent_dim=latent_dim)
    outs = jax.block_until_ready(outs)

    refs = dagmm_forward_ref(x, params)
    names = ("z_c", "x_hat", "rec_error", "z", "gamma")
    for name, o, r in zip(names, outs, refs):
        assert o.shape == r.shape, (name, o.shape, r.shape)
        if name == "gamma":
            # gamma uses the approximate EUP reciprocal -> looser tolerance
            assert jnp.allclose(o, r, atol=2e-3, rtol=2e-3), name
        else:
            assert jnp.allclose(o, r, atol=1e-5, rtol=1e-5), name

    print("KERNEL_OK")
</pallas_src>

<mosaic_0001>
module attributes {stable_mosaic.version = 11 : i64} {
  func.func @dagmm_kernel(%arg0: i32, %arg1: memref<16x16xf32, #tpu.memory_space<vmem>>, %arg2: memref<96x128xf32, #tpu.memory_space<vmem>>, %arg3: memref<8x128xf32, #tpu.memory_space<vmem>>, %arg4: memref<16x128xf32, #tpu.memory_space<vmem>>) attributes {dimension_semantics = [#tpu.dimension_semantics<parallel>], iteration_bounds = array<i64: 1>, scalar_prefetch = 0 : i64, scratch_operands = 0 : i64, tpu.core_type = #tpu.core_type<tc>, window_params = [{transform_indices = @transform_0, window_bounds = array<i64: 16, 16>}, {pipeline_mode = #tpu.pipeline_mode<synchronous>, transform_indices = @transform_1, window_bounds = array<i64: 96, 128>}, {pipeline_mode = #tpu.pipeline_mode<synchronous>, transform_indices = @transform_2, window_bounds = array<i64: 8, 128>}, {transform_indices = @transform_3, window_bounds = array<i64: 16, 128>}]} {
    %c0 = arith.constant 0 : index
    %c0_0 = arith.constant 0 : index
    %0 = vector.load %arg1[%c0, %c0_0] : memref<16x16xf32, #tpu.memory_space<vmem>>, vector<16x16xf32>
    %c0_1 = arith.constant 0 : index
    %c0_2 = arith.constant 0 : index
    %1 = vector.load %arg2[%c0_1, %c0_2] : memref<96x128xf32, #tpu.memory_space<vmem>>, vector<16x10xf32>
    %c0_3 = arith.constant 0 : index
    %c0_4 = arith.constant 0 : index
    %2 = vector.load %arg3[%c0_3, %c0_4] : memref<8x128xf32, #tpu.memory_space<vmem>>, vector<1x10xf32>
    %cst = arith.constant dense<0.000000e+00> : vector<16x10xf32>
    %3 = tpu.matmul %0, %1, %cst {dimension_numbers = #tpu.dot_dimension_numbers<[1], [0], [0], [1], [0, 0, 1, 1], [], []>} : vector<16x16xf32>, vector<16x10xf32>, vector<16x10xf32> -> vector<16x10xf32>
    %4 = vector.broadcast %2 : vector<1x10xf32> to vector<16x10xf32>
    %5 = arith.addf %3, %4 : vector<16x10xf32>
    %cst_5 = arith.constant 0.000000e+00 : f32
    %6 = vector.broadcast %cst_5 : f32 to vector<16x10xf32>
    %7 = arith.maximumf %5, %6 : vector<16x10xf32>
    %c16 = arith.constant 16 : index
    %c0_6 = arith.constant 0 : index
    %8 = vector.load %arg2[%c16, %c0_6] : memref<96x128xf32, #tpu.memory_space<vmem>>, vector<10x5xf32>
    %c1 = arith.constant 1 : index
    %c0_7 = arith.constant 0 : index
    %9 = vector.load %arg3[%c1, %c0_7] : memref<8x128xf32, #tpu.memory_space<vmem>>, vector<1x5xf32>
    %cst_8 = arith.constant dense<0.000000e+00> : vector<16x5xf32>
    %10 = tpu.matmul %7, %8, %cst_8 {dimension_numbers = #tpu.dot_dimension_numbers<[1], [0], [0], [1], [0, 0, 1, 1], [], []>} : vector<16x10xf32>, vector<10x5xf32>, vector<16x5xf32> -> vector<16x5xf32>
    %11 = vector.broadcast %9 : vector<1x5xf32> to vector<16x5xf32>
    %12 = arith.addf %10, %11 : vector<16x5xf32>
    %cst_9 = arith.constant 0.000000e+00 : f32
    %13 = vector.broadcast %cst_9 : f32 to vector<16x5xf32>
    %14 = arith.maximumf %12, %13 : vector<16x5xf32>
    %c32 = arith.constant 32 : index
    %c0_10 = arith.constant 0 : index
    %15 = vector.load %arg2[%c32, %c0_10] : memref<96x128xf32, #tpu.memory_space<vmem>>, vector<5x4xf32>
    %c2 = arith.constant 2 : index
    %c0_11 = arith.constant 0 : index
    %16 = vector.load %arg3[%c2, %c0_11] : memref<8x128xf32, #tpu.memory_space<vmem>>, vector<1x4xf32>
    %cst_12 = arith.constant dense<0.000000e+00> : vector<16x4xf32>
    %17 = tpu.matmul %14, %15, %cst_12 {dimension_numbers = #tpu.dot_dimension_numbers<[1], [0], [0], [1], [0, 0, 1, 1], [], []>} : vector<16x5xf32>, vector<5x4xf32>, vector<16x4xf32> -> vector<16x4xf32>
    %18 = vector.broadcast %16 : vector<1x4xf32> to vector<16x4xf32>
    %19 = arith.addf %17, %18 : vector<16x4xf32>
    %c40 = arith.constant 40 : index
    %c0_13 = arith.constant 0 : index
    %20 = vector.load %arg2[%c40, %c0_13] : memref<96x128xf32, #tpu.memory_space<vmem>>, vector<4x5xf32>
    %c3 = arith.constant 3 : index
    %c0_14 = arith.constant 0 : index
    %21 = vector.load %arg3[%c3, %c0_14] : memref<8x128xf32, #tpu.memory_space<vmem>>, vector<1x5xf32>
    %cst_15 = arith.constant dense<0.000000e+00> : vector<16x5xf32>
    %22 = tpu.matmul %19, %20, %cst_15 {dimension_numbers = #tpu.dot_dimension_numbers<[1], [0], [0], [1], [0, 0, 1, 1], [], []>} : vector<16x4xf32>, vector<4x5xf32>, vector<16x5xf32> -> vector<16x5xf32>
    %23 = vector.broadcast %21 : vector<1x5xf32> to vector<16x5xf32>
    %24 = arith.addf %22, %23 : vector<16x5xf32>
    %cst_16 = arith.constant 0.000000e+00 : f32
    %25 = vector.broadcast %cst_16 : f32 to vector<16x5xf32>
    %26 = arith.maximumf %24, %25 : vector<16x5xf32>
    %c48 = arith.constant 48 : index
    %c0_17 = arith.constant 0 : index
    %27 = vector.load %arg2[%c48, %c0_17] : memref<96x128xf32, #tpu.memory_space<vmem>>, vector<5x10xf32>
    %c4 = arith.constant 4 : index
    %c0_18 = arith.constant 0 : index
    %28 = vector.load %arg3[%c4, %c0_18] : memref<8x128xf32, #tpu.memory_space<vmem>>, vector<1x10xf32>
    %cst_19 = arith.constant dense<0.000000e+00> : vector<16x10xf32>
    %29 = tpu.matmul %26, %27, %cst_19 {dimension_numbers = #tpu.dot_dimension_numbers<[1], [0], [0], [1], [0, 0, 1, 1], [], []>} : vector<16x5xf32>, vector<5x10xf32>, vector<16x10xf32> -> vector<16x10xf32>
    %30 = vector.broadcast %28 : vector<1x10xf32> to vector<16x10xf32>
    %31 = arith.addf %29, %30 : vector<16x10xf32>
    %cst_20 = arith.constant 0.000000e+00 : f32
    %32 = vector.broadcast %cst_20 : f32 to vector<16x10xf32>
    %33 = arith.maximumf %31, %32 : vector<16x10xf32>
    %c56 = arith.constant 56 : index
    %c0_21 = arith.constant 0 : index
    %34 = vector.load %arg2[%c56, %c0_21] : memref<96x128xf32, #tpu.memory_space<vmem>>, vector<10x16xf32>
    %c5 = arith.constant 5 : index
    %c0_22 = arith.constant 0 : index
    %35 = vector.load %arg3[%c5, %c0_22] : memref<8x128xf32, #tpu.memory_space<vmem>>, vector<1x16xf32>
    %cst_23 = arith.constant dense<0.000000e+00> : vector<16x16xf32>
    %36 = tpu.matmul %33, %34, %cst_23 {dimension_numbers = #tpu.dot_dimension_numbers<[1], [0], [0], [1], [0, 0, 1, 1], [], []>} : vector<16x10xf32>, vector<10x16xf32>, vector<16x16xf32> -> vector<16x16xf32>
    %37 = vector.broadcast %35 : vector<1x16xf32> to vector<16x16xf32>
    %38 = arith.addf %36, %37 : vector<16x16xf32>
    %39 = arith.subf %0, %38 : vector<16x16xf32>
    %40 = arith.mulf %39, %39 : vector<16x16xf32>
    %cst_24 = arith.constant dense<0.000000e+00> : vector<16xf32>
    %41 = vector.multi_reduction <add>, %40, %cst_24 [1] : vector<16x16xf32> to vector<16xf32>
    %42 = vector.shape_cast %41 : vector<16xf32> to vector<16x1xf32>
    %cst_25 = arith.constant 6.250000e-02 : f32
    %43 = vector.broadcast %cst_25 : f32 to vector<16x1xf32>
    %44 = arith.mulf %42, %43 : vector<16x1xf32>
    %45 = tpu.concatenate %19, %44 in 1 : vector<16x4xf32>, vector<16x1xf32> -> vector<16x5xf32>
    %c72 = arith.constant 72 : index
    %c0_26 = arith.constant 0 : index
    %46 = vector.load %arg2[%c72, %c0_26] : memref<96x128xf32, #tpu.memory_space<vmem>>, vector<5x10xf32>
    %c6 = arith.constant 6 : index
    %c0_27 = arith.constant 0 : index
    %47 = vector.load %arg3[%c6, %c0_27] : memref<8x128xf32, #tpu.memory_space<vmem>>, vector<1x10xf32>
    %cst_28 = arith.constant dense<0.000000e+00> : vector<16x10xf32>
    %48 = tpu.matmul %45, %46, %cst_28 {dimension_numbers = #tpu.dot_dimension_numbers<[1], [0], [0], [1], [0, 0, 1, 1], [], []>} : vector<16x5xf32>, vector<5x10xf32>, vector<16x10xf32> -> vector<16x10xf32>
    %49 = vector.broadcast %47 : vector<1x10xf32> to vector<16x10xf32>
    %50 = arith.addf %48, %49 : vector<16x10xf32>
    %51 = math.tanh %50 : vector<16x10xf32>
    %c80 = arith.constant 80 : index
    %c0_29 = arith.constant 0 : index
    %52 = vector.load %arg2[%c80, %c0_29] : memref<96x128xf32, #tpu.memory_space<vmem>>, vector<10x2xf32>
    %c7 = arith.constant 7 : index
    %c0_30 = arith.constant 0 : index
    %53 = vector.load %arg3[%c7, %c0_30] : memref<8x128xf32, #tpu.memory_space<vmem>>, vector<1x2xf32>
    %cst_31 = arith.constant dense<0.000000e+00> : vector<16x2xf32>
    %54 = tpu.matmul %51, %52, %cst_31 {dimension_numbers = #tpu.dot_dimension_numbers<[1], [0], [0], [1], [0, 0, 1, 1], [], []>} : vector<16x10xf32>, vector<10x2xf32>, vector<16x2xf32> -> vector<16x2xf32>
    %55 = vector.broadcast %53 : vector<1x2xf32> to vector<16x2xf32>
    %56 = arith.addf %54, %55 : vector<16x2xf32>
    %cst_32 = arith.constant dense<0xFF800000> : vector<16xf32>
    %57 = vector.multi_reduction <maximumf>, %56, %cst_32 [1] : vector<16x2xf32> to vector<16xf32>
    %58 = vector.shape_cast %57 : vector<16xf32> to vector<16x1xf32>
    %59 = vector.broadcast %58 : vector<16x1xf32> to vector<16x2xf32>
    %60 = arith.subf %56, %59 : vector<16x2xf32>
    %61 = math.exp %60 : vector<16x2xf32>
    %cst_33 = arith.constant dense<0.000000e+00> : vector<16xf32>
    %62 = vector.multi_reduction <add>, %61, %cst_33 [1] : vector<16x2xf32> to vector<16xf32>
    %63 = vector.shape_cast %62 : vector<16xf32> to vector<16x1xf32>
    %64 = tpu.reciprocal %63 {approx = true} : vector<16x1xf32> -> vector<16x1xf32>
    %65 = vector.broadcast %64 : vector<16x1xf32> to vector<16x2xf32>
    %66 = arith.mulf %61, %65 : vector<16x2xf32>
    %cst_34 = arith.constant 0.000000e+00 : f32
    %67 = vector.broadcast %cst_34 : f32 to vector<16x105xf32>
    %68 = tpu.concatenate %45, %38, %66, %67 in 1 : vector<16x5xf32>, vector<16x16xf32>, vector<16x2xf32>, vector<16x105xf32> -> vector<16x128xf32>
    %c0_35 = arith.constant 0 : index
    %c0_36 = arith.constant 0 : index
    %69 = vector.load %arg4[%c0_35, %c0_36] : memref<16x128xf32, #tpu.memory_space<vmem>>, vector<16x128xf32>
    tpu.vector_store %arg4[%c0_35, %c0_36], %68 {strides = array<i32>} : memref<16x128xf32, #tpu.memory_space<vmem>>, vector<16x128xf32>,
    return
  }
  func.func @transform_0(%arg0: i32) -> (i32, i32) {
    %c0_i32 = arith.constant 0 : i32
    %c0_i32_0 = arith.constant 0 : i32
    return %arg0, %c0_i32 : i32, i32
  }
  func.func @transform_1(%arg0: i32) -> (i32, i32) {
    %c0_i32 = arith.constant 0 : i32
    %c0_i32_0 = arith.constant 0 : i32
    %c0_i32_1 = arith.constant 0 : i32
    return %c0_i32, %c0_i32_0 : i32, i32
  }
  func.func @transform_2(%arg0: i32) -> (i32, i32) {
    %c0_i32 = arith.constant 0 : i32
    %c0_i32_0 = arith.constant 0 : i32
    %c0_i32_1 = arith.constant 0 : i32
    return %c0_i32, %c0_i32_0 : i32, i32
  }
  func.func @transform_3(%arg0: i32) -> (i32, i32) {
    %c0_i32 = arith.constant 0 : i32
    %c0_i32_0 = arith.constant 0 : i32
    return %arg0, %c0_i32 : i32, i32
  }
}

</mosaic_0001>

<bundles_post_ra>
// kernel: dagmm_forward.1
= control target key start
LH: loop header
LB: loop body
LE: loop exit
PB: predicated region body
PF: predicated region fallthrough
CT: control target
= control target key end

     0   :  { %8 = vsyncpa [#allocation3], 0  ;;  %s1007_s12 = smov [#allocation2]   ;;  %s1145_s0 = inlined_call_operand.vmem [shape: f32[16,16], index: 0, kind: input, shape index: {}]   ;;  %s1146_s1 = inlined_call_operand.hbm [shape: f32[96,128], index: 1, kind: input, shape index: {}]   ;;  %s1147_s2 = inlined_call_operand.vmem [shape: f32[8,128], index: 2, kind: input, shape index: {}]   ;;  %s1148_s3 = inlined_call_operand.vmem [shape: f32[16,128], index: 3, kind: output, shape index: {}]  }
   0x1   :  { %s16_s13 = sshll.u32 %s1007_s12, 4  ;;  %s983_s16 = scalar_lea.hbm %s1146_s1, 1536  ;;  %s17_s13 = int_to_ptr.vmem [resolvable:$true] %s16_s13 }
   0x2   :  { %p984_p0 = scmp.ne.s32.totalorder %s1146_s1, %s983_s16  ;;  %p987_p1 = scmp.lt.u32.totalorder %s983_s16, %s1146_s1 }
   0x4   :  { %p989_p2 = pnand %p987_p1, %p984_p0 }
   0x6   :  { %992 = shalt.err (!%p989_p2)
}
   0x7   :  { %s993_s21 = scalar_lea.vmem %s17_s13, 1536  ;;  %p998_p4 = scmp.lt.s32.totalorder %s17_s13, %s17_s13 }
   0x8   :  { %p994_p3 = scmp.ne.s32.totalorder %s17_s13, %s993_s21  ;;  %p999_p5 = scmp.lt.s32.totalorder %s993_s21, %s993_s21 }
   0xa   :  { %p1000_p6 = por %p999_p5, %p998_p4 }
   0xc   :  { %p1001_p7 = pnand %p1000_p6, %p994_p3 }
   0xe   :  { %1004 = shalt.err (!%p1001_p7)
}
   0xf   :  { %s1008_s22 = smov 128   ;;  %s1009_s23 = smov 8  }
  0x10   :  { %22 = dma.hbm_to_vmem [thread:$0]  %s1146_s1, 1536, %s17_s13, [#allocation3], %s1008_s22, %s1008_s22, %s1009_s23  }
  0x11   :  { %1005 = dma.done.wait [#allocation3], 1536  }
  0x12   :  { %1006 = vsyncadd [#allocation3], 4294965760  ;;  %vm37_vm0 = vcmask 130048   ;;  %v30_v0 = vld [vmem:[#allocation2] sm:$0xff]  ;;  %v31_v1 = vld [vmem:[#allocation2 + $0x8] sm:$0xff]  ;;  %vm135_vm1 = vcmask 1041408  }
  0x13   :  { %v1048_v2 = vld [vmem:[%s1145_s0] sm:$0xff]  ;;  %v943_v3 = vpack.c.bf16 %v31_v1, %v30_v0  ;;  %v1055_v4 = vld [vmem:[%s1145_s0 + $0x8] sm:$0xff]  ;;  %vm1010_vm2 = vmmov 1   ;;  %vm128_vm4 = vcmask 80896   ;;  %v216_v16 = vld [vmem:[#allocation2 + $0x20] sm:$0x1f] }
  0x14   :  { %899 = vmatprep.mubr.msk.f32.mxu0 %vm37_vm0, %v1048_v2  ;;  %v121_v5 = vld [vmem:[#allocation2 + $0x10] sm:$0xff]  ;;  %v122_v6 = vld [vmem:[#allocation2 + $0x18] sm:$0x3]  ;;  %vm1059_vm3 = vmpackc.low %vm135_vm1, %vm1010_vm2  ;;  %vm229_vm5 = vcmask 1044480   ;;  %vm222_vm6 = vcmask 39936   ;;  %vm321_vm7 = vcmask 1043456  }
  0x15   :  { %944 = vmatprep.subr.bf16.mxu0 %v943_v3  ;;  %v947_v7 = vpack.c.bf16 %v122_v6, %v121_v5  ;;  %v836_v9 = vld [vmem:[%s1147_s2] ss:$0 sm:$0xff]  ;;  %v839_v17 = vld [vmem:[%s1147_s2 + $0x1] ss:$0 sm:$0xff]  ;;  %v308_v24 = vld [vmem:[#allocation2 + $0x28] sm:$0xf] }
  0x16   :  { %946 = vmatpush3.bf16.msra.mxu0 %v943_v3  ;;  %v843_v25 = vld [vmem:[%s1147_s2 + $0x2] ss:$0 sm:$0xff]  ;;  %vm314_vm8 = vcmask 31744   ;;  %v847_v31 = vld [vmem:[%s1147_s2 + $0x3] ss:$0 sm:$0xff]  ;;  %v494_v38 = vld [vmem:[#allocation2 + $0x38] sm:$0xff] }
  0x17   :  { %949 = vmatprep.subr.msk.bf16.mxu1 %vm1059_vm3, %v947_v7  ;;  %909 = vmatprep.subr.msk.mxu0 %vm229_vm5, %v216_v16  ;;  %v402_v30 = vld [vmem:[#allocation2 + $0x30] sm:$0x1f]  ;;  %v495_v39 = vld [vmem:[#allocation2 + $0x40] sm:$0x3]  ;;  %v855_v48 = vld [vmem:[%s1147_s2 + $0x5] ss:$0 sm:$0xff] }
  0x18   :  { %952 = vmatpush3.bf16.msk.msra.mxu1 %vm1059_vm3, %v947_v7  ;;  %v953_v40 = vpack.c.bf16 %v495_v39, %v494_v38  ;;  %v851_v41 = vld [vmem:[%s1147_s2 + $0x4] ss:$0 sm:$0xff]  ;;  %v599_v59 = vld [vmem:[#allocation2 + $0x48] sm:$0x1f]  ;;  %v692_v3 = vld [vmem:[#allocation2 + $0x58] sm:$0x3] }
  0x19   :  { %900 = vmatmul.mubr.msk.f32.vlgmr.msra.gmra.mrb[0].mxu0 %vm37_vm0, %v1055_v4  ;;  %914 = vmatprep.subr.msk.mxu1 %vm321_vm7, %v308_v24  ;;  %v859_v5 = vld [vmem:[%s1147_s2 + $0x6] ss:$0 sm:$0xff]  ;;  %v863_v8 = vld [vmem:[%s1147_s2 + $0x7] ss:$0 sm:$0xff]  ;;  %vm782_vm9 = vcmask 15360   ;;  %s1011_s2 = smov 5  }
  0x1a   :  { %910 = vmatpush3.msk.msra.mxu0 %vm229_vm5, %v216_v16  ;;  %s1012_s17 = smov 21   ;;  %vm823_vm10 = vcmask 171008   ;;  %vm826_vm11 = vcmask 187392  }
  0x1b   :  { %919 = vmatprep.subr.msk.mxu0 %vm229_vm5, %v402_v30 }
  0xec   :  { %v901_v10 = vpop.f32.mrb[0].mxu0 }
  0xed   :  { %v116_v11 = vadd.f32 %v901_v10, %v836_v9  ;;  %v110_v12 = vpop.f32.mrb[1].mxu0 }
  0xee   :  { %v111_v13 = vadd.f32 %v836_v9, %v110_v12 }
  0xef   :  { %v120_v15 = vmax.f32 %v116_v11, 0.0 }
  0xf0   :  { %v119_v14 = vmax.f32 %v111_v13, 0.0 }
  0xf2   :  { %906 = vmatprep.mubr.msk.f32.mxu1 %vm128_vm4, %v119_v14 }
  0xf3   :  { %907 = vmatmul.mubr.msk.f32.vlgmr.msra.gmra.mrb[0].mxu1 %vm128_vm4, %v120_v15 }
  0xf4   :  { %915 = vmatpush3.msk.msra.mxu1 %vm321_vm7, %v308_v24 }
  0xf5   :  { %955 = vmatprep.subr.msk.bf16.mxu1 %vm1059_vm3, %v953_v40 }
 0x1c6   :  { %v908_v18 = vpop.f32.mrb[0].mxu1 }
 0x1c7   :  { %v211_v19 = vadd.f32 %v908_v18, %v839_v17  ;;  %v205_v20 = vpop.f32.mrb[1].mxu1 }
 0x1c8   :  { %v206_v21 = vadd.f32 %v839_v17, %v205_v20 }
 0x1c9   :  { %v215_v23 = vmax.f32 %v211_v19, 0.0 }
 0x1ca   :  { %v214_v22 = vmax.f32 %v206_v21, 0.0 }
 0x1cc   :  { %911 = vmatprep.mubr.msk.f32.mxu0 %vm222_vm6, %v214_v22 }
 0x1cd   :  { %912 = vmatmul.mubr.msk.f32.vlgmr.msra.gmra.mrb[2].mxu0 %vm222_vm6, %v215_v23 }
 0x1ce   :  { %920 = vmatpush3.msk.msra.mxu0 %vm229_vm5, %v402_v30 }
 0x1cf   :  { %931 = vmatprep.subr.msk.mxu0 %vm229_vm5, %v599_v59 }
 0x2a0   :  { %v913_v26 = vpop.f32.mrb[2].mxu0 }
 0x2a1   :  { %v299_v27 = vpop.f32.mrb[3].mxu0  ;;  %v305_v29 = vadd.f32 %v913_v26, %v843_v25 }
 0x2a2   :  { %v300_v28 = vadd.f32 %v843_v25, %v299_v27 }
 0x2a4   :  { %916 = vmatprep.mubr.msk.f32.mxu1 %vm314_vm8, %v300_v28 }
 0x2a5   :  { %917 = vmatmul.mubr.msk.f32.vlgmr.msra.gmra.mrb[2].mxu1 %vm314_vm8, %v305_v29 }
 0x2a6   :  { %958 = vmatpush3.bf16.msk.msra.mxu1 %vm1059_vm3, %v953_v40 }
 0x378   :  { %v918_v32 = vpop.f32.mrb[2].mxu1 }
 0x379   :  { %v397_v33 = vadd.f32 %v918_v32, %v847_v31  ;;  %v391_v34 = vpop.f32.mrb[3].mxu1 }
 0x37a   :  { %v392_v35 = vadd.f32 %v847_v31, %v391_v34 }
 0x37b   :  { %v401_v37 = vmax.f32 %v397_v33, 0.0 }
 0x37c   :  { %v400_v36 = vmax.f32 %v392_v35, 0.0 }
 0x37e   :  { %921 = vmatprep.mubr.msk.f32.mxu0 %vm222_vm6, %v400_v36 }
 0x37f   :  { %922 = vmatmul.mubr.msk.f32.vlgmr.msra.gmra.mrb[4].mxu0 %vm222_vm6, %v401_v37 }
 0x380   :  { %932 = vmatpush3.msk.msra.mxu0 %vm229_vm5, %v599_v59 }
 0x452   :  { %v923_v42 = vpop.f32.mrb[4].mxu0 }
 0x453   :  { %v489_v43 = vadd.f32 %v923_v42, %v851_v41  ;;  %v483_v44 = vpop.f32.mrb[5].mxu0 }
 0x454   :  { %v484_v45 = vadd.f32 %v851_v41, %v483_v44 }
 0x455   :  { %v493_v47 = vmax.f32 %v489_v43, 0.0 }
 0x456   :  { %v492_v46 = vmax.f32 %v484_v45, 0.0 }
 0x458   :  { %928 = vmatprep.mubr.msk.f32.mxu1 %vm128_vm4, %v492_v46 }
 0x459   :  { %929 = vmatmul.mubr.msk.f32.vlgmr.msra.gmra.mrb[4].mxu1 %vm128_vm4, %v493_v47 }
 0x52c   :  { %v930_v49 = vpop.f32.mrb[4].mxu1 }
 0x52d   :  { %v582_v50 = vadd.f32 %v930_v49, %v855_v48  ;;  %v576_v51 = vpop.f32.mrb[5].mxu1 }
 0x52e   :  { %v577_v52 = vadd.f32 %v855_v48, %v576_v51 }
 0x52f   :  { %v586_v53 = vsub.f32 %v1055_v4, %v582_v50 }
 0x530   :  { %v585_v54 = vsub.f32 %v1048_v2, %v577_v52  ;;  %v691_v2 = vld [vmem:[#allocation2 + $0x50] sm:$0xff] }
 0x531   :  { %v588_v57 = vmul.f32 %v586_v53, %v586_v53  ;;  %v959_v4 = vpack.c.bf16 %v692_v3, %v691_v2 }
 0x532   :  { %v587_v55 = vmul.f32 %v585_v54, %v585_v54 }
 0x533   :  { %v592_v58 = vsel %vm37_vm0, %v588_v57, 0.0  ;;  %961 = vmatprep.subr.msk.bf16.mxu1 %vm1059_vm3, %v959_v4 }
 0x534   :  { %v589_v56 = vsel %vm37_vm0, %v587_v55, 0.0  ;;  %964 = vmatpush3.bf16.msk.msra.mxu1 %vm1059_vm3, %v959_v4 }
 0x535   :  { %590 = vadd.xlane.f32.xlu0 %v589_v56 }
 0x539   :  { %593 = vadd.xlane.f32.xlu0 %v592_v58 }
 0x5c2   :  { %v591_v60 = vpop.xlane.xlu0 %590 }
 0x5c3   :  { %v595_v61 = vmul.f32 0.0625, %v591_v60 }
 0x5c5   :  { %v1110_v62 = vsel %vm314_vm8, %v300_v28, %v595_v61 }
 0x5c6   :  { %933 = vmatprep.mubr.msk.f32.mxu0 %vm222_vm6, %v1110_v62  ;;  %v594_v63 = vpop.xlane.xlu0 %593 }
 0x5c7   :  { %v596_v0 = vmul.f32 0.0625, %v594_v63 }
 0x5c9   :  { %v1115_v1 = vsel %vm314_vm8, %v305_v29, %v596_v0 }
 0x5ca   :  { %934 = vmatmul.mubr.msk.f32.vlgmr.msra.gmra.mrb[6].mxu0 %vm222_vm6, %v1115_v1 }
 0x69d   :  { %v935_v6 = vpop.f32.mrb[6].mxu0 }
 0x69e   :  { %v686_v7 = vadd.f32 %v935_v6, %v859_v5  ;;  %v680_v9 = vpop.f32.mrb[7].mxu0 }
 0x69f   :  { %v681_v10 = vadd.f32 %v859_v5, %v680_v9 }
 0x6a1   :  { %971 = vtanh.f32 %v681_v10 }
 0x6a2   :  { %973 = vtanh.f32 %v686_v7 }
 0x6ab   :  { %v972_v11 = vpop.eup %971 }
 0x6ac   :  { %v974_v12 = vpop.eup %973  ;;  %940 = vmatprep.mubr.msk.f32.mxu1 %vm128_vm4, %v972_v11 }
 0x6ad   :  { %941 = vmatmul.mubr.msk.f32.vlgmr.msra.gmra.mrb[6].mxu1 %vm128_vm4, %v974_v12 }
 0x780   :  { %v942_v13 = vpop.f32.mrb[6].mxu1 }
 0x781   :  { %v773_v14 = vpop.f32.mrb[7].mxu1  ;;  %v779_v16 = vadd.f32 %v942_v13, %v863_v8 }
 0x782   :  { %v774_v15 = vadd.f32 %v863_v8, %v773_v14 }
 0x783   :  { %v786_v18 = vsel %vm782_vm9, %v779_v16, -inf }
 0x784   :  { %v783_v17 = vsel %vm782_vm9, %v774_v15, -inf }
 0x785   :  { %784 = vmax.xlane.f32.xlu1 %v783_v17 }
 0x789   :  { %787 = vmax.xlane.f32.xlu1 %v786_v18 }
 0x812   :  { %v785_v19 = vpop.xlane.xlu1 %784 }
 0x813   :  { %v789_v20 = vsub.f32 %v774_v15, %v785_v19 }
 0x815   :  { %v791_v21 = vmul.f32 1.442695, %v789_v20 }
 0x816   :  { %v788_v22 = vpop.xlane.xlu1 %787 }
 0x817   :  { %975 = vpow2.f32 %v791_v21  ;;  %v790_v23 = vsub.f32 %v779_v16, %v788_v22 }
 0x819   :  { %v793_v24 = vmul.f32 1.442695, %v790_v23 }
 0x81b   :  { %977 = vpow2.f32 %v793_v24 }
 0x821   :  { %v976_v25 = vpop.eup %975 }
 0x822   :  { %v795_v26 = vsel %vm782_vm9, %v976_v25, 0.0 }
 0x823   :  { %796 = vadd.xlane.f32.xlu0 %v795_v26 }
 0x825   :  { %v978_v27 = vpop.eup %977 }
 0x826   :  { %v798_v28 = vsel %vm782_vm9, %v978_v27, 0.0 }
 0x827   :  { %799 = vadd.xlane.f32.xlu1 %v798_v28 }
 0x838   :  { %809 = vrot.lane.b32.xlu1 %v582_v50, %s1011_s2 }
 0x839   :  { %807 = vrot.lane.b32.xlu0 %v577_v52, %s1011_s2 }
 0x8b0   :  { %v797_v29 = vpop.xlane.xlu0 %796 }
 0x8b1   :  { %979 = vrcp.f32 %v797_v29 }
 0x8b4   :  { %v800_v30 = vpop.xlane.xlu1 %799  ;;  %v808_v36 = vpop.permute.xlu0 %807 }
 0x8b5   :  { %981 = vrcp.f32 %v800_v30  ;;  %v821_v37 = vsel %vm222_vm6, %v1110_v62, %v808_v36 }
 0x8b8   :  { %v810_v35 = vpop.permute.xlu1 %809 }
 0x8b9   :  { %v822_v41 = vsel %vm222_vm6, %v1115_v1, %v810_v35 }
 0x8bb   :  { %v980_v31 = vpop.eup %979 }
 0x8bc   :  { %v803_v32 = vmul.f32 %v980_v31, %v976_v25 }
 0x8be   :  { %815 = vrot.lane.b32.xlu1 %v803_v32, %s1012_s17 }
 0x8bf   :  { %v982_v33 = vpop.eup %981 }
 0x8c0   :  { %v804_v34 = vmul.f32 %v982_v33, %v978_v27 }
 0x8c2   :  { %817 = vrot.lane.b32.xlu1 %v804_v34, %s1012_s17 }
 0x930   :  { %v816_v38 = vpop.permute.xlu1 %815 }
 0x931   :  { %v824_v39 = vsel %vm823_vm10, %v821_v37, %v816_v38 }
 0x932   :  { %v827_v40 = vsel %vm826_vm11, %v824_v39, 0.0 }
 0x933   :  { %829 = vst [vmem:[%s1148_s3] sm:$0xff] %v827_v40 }
 0x934   :  { %v818_v42 = vpop.permute.xlu1 %817 }
 0x935   :  { %v825_v43 = vsel %vm823_vm10, %v822_v41, %v818_v42 }
 0x936   :  { %v828_v44 = vsel %vm826_vm11, %v825_v43, 0.0 }
 0x937   :  { %830 = vst [vmem:[%s1148_s3 + $0x8] sm:$0xff] %v828_v44 }
 0x938   :  { %835 = vsyncpa [#allocation3], 1 }

</bundles_post_ra>
